<compile_context>
chip_gen: v7x
topology: tpu7x:2x2x1
jax: 0.10.0
libtpu: 0.0.40
codegen_flags: <defaults>
</compile_context>

<pallas_src>
import functools

import jax
import jax.numpy as jnp
import numpy as np
from jax.experimental import pallas as pl
from jax.experimental.pallas import tpu as pltpu


def _mpu_loss_kernel(x_ref, lab_ref, ui_ref, uk_ref, ce_ref, pk_ref, *, num_class):
    k = num_class

    @pl.when(pl.program_id(1) == 0)
    def _():
        ui_ref[...] = jnp.zeros_like(ui_ref)
        uk_ref[...] = jnp.zeros_like(uk_ref)
        ce_ref[...] = jnp.zeros_like(ce_ref)
        pk_ref[...] = jnp.zeros_like(pk_ref)

    x = x_ref[...].astype(jnp.float32)       # (C, TN): classes on sublanes, samples on lanes
    lab = lab_ref[...]                       # (1, TN) int32; -1 marks padded samples
    c, tn = x.shape

    # Numerically-stable softmax along the class (sublane) axis.
    m = jnp.max(x, axis=0, keepdims=True)              # (1, TN)
    e = jnp.exp(x - m)                                 # (C, TN)
    se = jnp.sum(e, axis=0, keepdims=True)             # (1, TN)
    inv_se = pl.reciprocal(se, approx=False)           # per-sample, not per-element
    soft = e * inv_se                                  # (C, TN)
    lse = m + jnp.log(se)                              # (1, TN) logsumexp

    is_u = (lab >= (k - 1)).astype(jnp.float32)                    # (1, TN) unlabeled
    is_p = ((lab >= 0) & (lab < (k - 1))).astype(jnp.float32)      # (1, TN) positive

    # -log(1 - softmax + 0.01): needed for classes 0..k-2 (unlabeled term) and
    # class k-1 (positive term) -> one full-tile log pass, reused for both.
    term_neg = -jnp.log(1.0 - soft + 0.01)             # (C, TN)

    ui_row = jnp.sum(term_neg[:k - 1, :], axis=0, keepdims=True) * is_u   # (1, TN)
    pk_row = term_neg[k - 1:k, :] * is_p                                  # (1, TN)
    # -log(softmax + 0.01) only on class k-1 (single sublane row, not full tile).
    uk_row = -jnp.log(soft[k - 1:k, :] + 0.01) * is_u                     # (1, TN)

    # Cross entropy on positive samples: logsumexp(x) - x[label].
    row = jax.lax.broadcasted_iota(jnp.int32, (c, tn), 0)
    x_lab = jnp.sum(x * (row == lab).astype(jnp.float32), axis=0, keepdims=True)
    ce_row = (lse - x_lab) * is_p                                         # (1, TN)

    ui_ref[...] += ui_row
    uk_ref[...] += uk_row
    ce_ref[...] += ce_row
    pk_ref[...] += pk_row


def mpu_loss(outputs, labels, prior, *, k, piW, pkW, uiW, ukW,
             tile_n=512, num_cores=2):
    """Pallas implementation of MPULoss.forward.

    outputs: (N, C=k) logits (any float dtype; cast to f32 per-tile in-kernel),
    labels: (N,) int, prior: scalar float.
    Returns (objective, positive_part, unlabeled_part) as scalars.
    """
    n, c = outputs.shape
    assert c == k

    # Lane-dense layout: samples on lanes, classes on sublanes.  No wrapper-side
    # dtype cast (the kernel casts per tile), so bf16 inputs stay bf16 in HBM.
    x_t = outputs.T                                   # (C, N)
    lab_pad = labels.astype(jnp.int32)

    # Pick a lane tile (multiple of 128) no larger than needed; pad N so it
    # splits evenly over num_cores * tiles.  Padded samples get label -1.
    per_core = -(-n // num_cores)
    per_core = ((per_core + 127) // 128) * 128
    tile = max(128, (min(tile_n, per_core) // 128) * 128)
    chunk = num_cores * tile
    n_pad = -(-n // chunk) * chunk
    pad = n_pad - n
    if pad:
        x_t = jnp.pad(x_t, ((0, 0), (0, pad)))
        lab_pad = jnp.pad(lab_pad, (0, pad), constant_values=-1)
    lab_row = lab_pad.reshape(1, n_pad)

    tiles_per_core = n_pad // chunk

    def in_map(p, i, tpc=tiles_per_core):
        return (0, p * tpc + i)

    def out_map(p, i):
        return (p, 0, 0)

    acc_shape = jax.ShapeDtypeStruct((num_cores, 1, tile), jnp.float32)
    acc_spec = pl.BlockSpec((None, 1, tile), out_map)   # kernel sees (1, tile)

    acc_ui, acc_uk, acc_ce, acc_pk = pl.pallas_call(
        functools.partial(_mpu_loss_kernel, num_class=k),
        out_shape=(acc_shape, acc_shape, acc_shape, acc_shape),
        grid_spec=pltpu.PrefetchScalarGridSpec(
            num_scalar_prefetch=0,
            grid=(num_cores, tiles_per_core),
            in_specs=[
                pl.BlockSpec((c, tile), in_map),
                pl.BlockSpec((1, tile), in_map),
            ],
            out_specs=[acc_spec, acc_spec, acc_spec, acc_spec],
        ),
        compiler_params=pltpu.CompilerParams(
            dimension_semantics=("parallel", "arbitrary")),
    )(x_t, lab_row)

    # Final (tiny) reductions and scalar weighting in plain JAX.
    s_ui = jnp.sum(acc_ui)
    s_uk = jnp.sum(acc_uk)
    s_ce = jnp.sum(acc_ce)
    s_pk = jnp.sum(acc_pk)

    lab_orig = labels.astype(jnp.int32)
    cnt_u = jnp.sum((lab_orig >= (k - 1)).astype(jnp.float32))
    cnt_p = jnp.asarray(n, jnp.float32) - cnt_u
    cnt_u_safe = jnp.maximum(cnt_u, 1.0)   # guard against empty groups (NaN/Inf)
    cnt_p_safe = jnp.maximum(cnt_p, 1.0)

    unlabeled_loss_i = s_ui / ((k - 1) * cnt_u_safe)
    unlabeled_loss_k = s_uk / cnt_u_safe
    positive_loss_i = s_ce / cnt_p_safe
    positive_loss_k = s_pk * prior

    pos = positive_loss_i * piW + positive_loss_k * pkW
    unl = unlabeled_loss_i * uiW + unlabeled_loss_k * ukW
    objective = pos + unl
    return objective, pos, unl


def _reference_numpy(outputs, labels, prior, k, piW, pkW, uiW, ukW):
    x = np.asarray(outputs, dtype=np.float32)
    lab = np.asarray(labels)
    m = x.max(axis=1, keepdims=True)
    e = np.exp(x - m)
    soft = e / e.sum(axis=1, keepdims=True)
    lse = (m + np.log(e.sum(axis=1, keepdims=True)))[:, 0]

    p_mask = lab < (k - 1)
    u_mask = lab >= (k - 1)
    xP, labP, softP = x[p_mask], lab[p_mask], soft[p_mask]
    softU = soft[u_mask]
    nu = softU.shape[0]
    np_ = xP.shape[0]

    ui = (-np.log(1.0 - softU[:, 0:k - 1] + 0.01)).sum(axis=0) / ((k - 1) * nu)
    uk = (-np.log(softU[:, k - 1] + 0.01)).sum() / nu
    unlabeled_i = ui.sum()
    unlabeled_k = uk

    ce = (lse[p_mask] - xP[np.arange(np_), labP]).mean()
    pos_k = (-np.log(1.0 - softP[:, k - 1] + 0.01)).sum() * prior

    pos = ce * piW + pos_k * pkW
    unl = unlabeled_i * uiW + unlabeled_k * ukW
    return pos + unl, pos, unl


if __name__ == "__main__":
    key = jax.random.PRNGKey(0)
    N, K = 300, 8                       # ragged N exercises the padding path
    piW, pkW, uiW, ukW = 1.0, 0.5, 0.3, 0.2
    prior = 0.7

    k_out, k_lab = jax.random.split(key)
    outputs = jax.random.normal(k_out, (N, K), dtype=jnp.float32)
    # labels in [0, K-1]; guarantee both positive (< K-1) and unlabeled (== K-1)
    labels = jax.random.randint(k_lab, (N,), 0, K)
    labels = labels.at[0].set(K - 1).at[1].set(0).astype(jnp.int32)

    obj, pos, unl = mpu_loss(outputs, labels, prior,
                             k=K, piW=piW, pkW=pkW, uiW=uiW, ukW=ukW)
    jax.block_until_ready((obj, pos, unl))

    ref_obj, ref_pos, ref_unl = _reference_numpy(
        np.asarray(outputs), np.asarray(labels), prior, K, piW, pkW, uiW, ukW)

    np.testing.assert_allclose(float(obj), ref_obj, rtol=1e-4, atol=1e-4)
    np.testing.assert_allclose(float(pos), ref_pos, rtol=1e-4, atol=1e-4)
    np.testing.assert_allclose(float(unl), ref_unl, rtol=1e-4, atol=1e-4)

    print("KERNEL_OK")
</pallas_src>

<mosaic_0001>
module attributes {stable_mosaic.version = 11 : i64} {
  func.func @_mpu_loss_kernel(%arg0: i32, %arg1: i32, %arg2: memref<8x256xf32, #tpu.memory_space<vmem>>, %arg3: memref<1x256xi32, #tpu.memory_space<vmem>>, %arg4: memref<1x1x256xf32, #tpu.memory_space<vmem>>, %arg5: memref<1x1x256xf32, #tpu.memory_space<vmem>>, %arg6: memref<1x1x256xf32, #tpu.memory_space<vmem>>, %arg7: memref<1x1x256xf32, #tpu.memory_space<vmem>>) attributes {dimension_semantics = [#tpu.dimension_semantics<parallel>, #tpu.dimension_semantics<arbitrary>], iteration_bounds = array<i64: 2, 1>, scalar_prefetch = 0 : i64, scratch_operands = 0 : i64, tpu.core_type = #tpu.core_type<tc>, window_params = [{transform_indices = @transform_0, window_bounds = array<i64: 8, 256>}, {transform_indices = @transform_1, window_bounds = array<i64: 1, 256>}, {transform_indices = @transform_2, window_bounds = array<i64: 1, 1, 256>}, {transform_indices = @transform_3, window_bounds = array<i64: 1, 1, 256>}, {transform_indices = @transform_4, window_bounds = array<i64: 1, 1, 256>}, {transform_indices = @transform_5, window_bounds = array<i64: 1, 1, 256>}]} {
    %c0_i32 = arith.constant 0 : i32
    %0 = arith.cmpi eq, %arg1, %c0_i32 : i32
    %1 = arith.extui %0 : i1 to i32
    %c0_i32_0 = arith.constant 0 : i32
    %2 = arith.cmpi ne, %1, %c0_i32_0 : i32
    scf.if %2 {
      %cst_38 = arith.constant 0.000000e+00 : f32
      %82 = vector.broadcast %cst_38 : f32 to vector<1x256xf32>
      %c0_39 = arith.constant 0 : index
      %c0_40 = arith.constant 0 : index
      %c0_41 = arith.constant 0 : index
      %83 = vector.load %arg4[%c0_39, %c0_40, %c0_41] : memref<1x1x256xf32, #tpu.memory_space<vmem>>, vector<1x1x256xf32>
      %84 = vector.shape_cast %83 : vector<1x1x256xf32> to vector<1x256xf32>
      %85 = vector.shape_cast %82 : vector<1x256xf32> to vector<1x1x256xf32>
      tpu.vector_store %arg4[%c0_39, %c0_40, %c0_41], %85 {strides = array<i32>} : memref<1x1x256xf32, #tpu.memory_space<vmem>>, vector<1x1x256xf32>,
      %cst_42 = arith.constant 0.000000e+00 : f32
      %86 = vector.broadcast %cst_42 : f32 to vector<1x256xf32>
      %c0_43 = arith.constant 0 : index
      %c0_44 = arith.constant 0 : index
      %c0_45 = arith.constant 0 : index
      %87 = vector.load %arg5[%c0_43, %c0_44, %c0_45] : memref<1x1x256xf32, #tpu.memory_space<vmem>>, vector<1x1x256xf32>
      %88 = vector.shape_cast %87 : vector<1x1x256xf32> to vector<1x256xf32>
      %89 = vector.shape_cast %86 : vector<1x256xf32> to vector<1x1x256xf32>
      tpu.vector_store %arg5[%c0_43, %c0_44, %c0_45], %89 {strides = array<i32>} : memref<1x1x256xf32, #tpu.memory_space<vmem>>, vector<1x1x256xf32>,
      %cst_46 = arith.constant 0.000000e+00 : f32
      %90 = vector.broadcast %cst_46 : f32 to vector<1x256xf32>
      %c0_47 = arith.constant 0 : index
      %c0_48 = arith.constant 0 : index
      %c0_49 = arith.constant 0 : index
      %91 = vector.load %arg6[%c0_47, %c0_48, %c0_49] : memref<1x1x256xf32, #tpu.memory_space<vmem>>, vector<1x1x256xf32>
      %92 = vector.shape_cast %91 : vector<1x1x256xf32> to vector<1x256xf32>
      %93 = vector.shape_cast %90 : vector<1x256xf32> to vector<1x1x256xf32>
      tpu.vector_store %arg6[%c0_47, %c0_48, %c0_49], %93 {strides = array<i32>} : memref<1x1x256xf32, #tpu.memory_space<vmem>>, vector<1x1x256xf32>,
      %cst_50 = arith.constant 0.000000e+00 : f32
      %94 = vector.broadcast %cst_50 : f32 to vector<1x256xf32>
      %c0_51 = arith.constant 0 : index
      %c0_52 = arith.constant 0 : index
      %c0_53 = arith.constant 0 : index
      %95 = vector.load %arg7[%c0_51, %c0_52, %c0_53] : memref<1x1x256xf32, #tpu.memory_space<vmem>>, vector<1x1x256xf32>
      %96 = vector.shape_cast %95 : vector<1x1x256xf32> to vector<1x256xf32>
      %97 = vector.shape_cast %94 : vector<1x256xf32> to vector<1x1x256xf32>
      tpu.vector_store %arg7[%c0_51, %c0_52, %c0_53], %97 {strides = array<i32>} : memref<1x1x256xf32, #tpu.memory_space<vmem>>, vector<1x1x256xf32>,
    } else {
    }
    %c0 = arith.constant 0 : index
    %c0_1 = arith.constant 0 : index
    %3 = vector.load %arg2[%c0, %c0_1] : memref<8x256xf32, #tpu.memory_space<vmem>>, vector<8x256xf32>
    %c0_2 = arith.constant 0 : index
    %c0_3 = arith.constant 0 : index
    %4 = vector.load %arg3[%c0_2, %c0_3] : memref<1x256xi32, #tpu.memory_space<vmem>>, vector<1x256xi32>
    %cst = arith.constant dense<0xFF800000> : vector<256xf32>
    %5 = vector.multi_reduction <maximumf>, %3, %cst [0] : vector<8x256xf32> to vector<256xf32>
    %6 = vector.shape_cast %5 : vector<256xf32> to vector<1x256xf32>
    %7 = vector.broadcast %6 : vector<1x256xf32> to vector<8x256xf32>
    %8 = arith.subf %3, %7 : vector<8x256xf32>
    %9 = math.exp %8 : vector<8x256xf32>
    %cst_4 = arith.constant dense<0.000000e+00> : vector<256xf32>
    %10 = vector.multi_reduction <add>, %9, %cst_4 [0] : vector<8x256xf32> to vector<256xf32>
    %11 = vector.shape_cast %10 : vector<256xf32> to vector<1x256xf32>
    %12 = tpu.reciprocal %11 : vector<1x256xf32> -> vector<1x256xf32>
    %13 = vector.broadcast %12 : vector<1x256xf32> to vector<8x256xf32>
    %14 = arith.mulf %9, %13 : vector<8x256xf32>
    %15 = math.log %11 : vector<1x256xf32>
    %16 = arith.addf %6, %15 : vector<1x256xf32>
    %c7_i32 = arith.constant 7 : i32
    %17 = vector.broadcast %c7_i32 : i32 to vector<1x256xi32>
    %18 = arith.cmpi sge, %4, %17 : vector<1x256xi32>
    %19 = arith.extui %18 : vector<1x256xi1> to vector<1x256xi32>
    %20 = arith.sitofp %19 : vector<1x256xi32> to vector<1x256xf32>
    %c0_i32_5 = arith.constant 0 : i32
    %21 = vector.broadcast %c0_i32_5 : i32 to vector<1x256xi32>
    %22 = arith.cmpi sge, %4, %21 : vector<1x256xi32>
    %c7_i32_6 = arith.constant 7 : i32
    %23 = vector.broadcast %c7_i32_6 : i32 to vector<1x256xi32>
    %24 = arith.cmpi slt, %4, %23 : vector<1x256xi32>
    %25 = arith.andi %22, %24 : vector<1x256xi1>
    %26 = arith.extui %25 : vector<1x256xi1> to vector<1x256xi32>
    %27 = arith.sitofp %26 : vector<1x256xi32> to vector<1x256xf32>
    %cst_7 = arith.constant 1.000000e+00 : f32
    %28 = vector.broadcast %cst_7 : f32 to vector<8x256xf32>
    %29 = arith.subf %28, %14 : vector<8x256xf32>
    %cst_8 = arith.constant 0.00999999977 : f32
    %30 = vector.broadcast %cst_8 : f32 to vector<8x256xf32>
    %31 = arith.addf %29, %30 : vector<8x256xf32>
    %32 = math.log %31 : vector<8x256xf32>
    %cst_9 = arith.constant 0.000000e+00 : f32
    %33 = vector.broadcast %cst_9 : f32 to vector<8x256xf32>
    %34 = arith.subf %33, %32 : vector<8x256xf32>
    %35 = vector.extract_strided_slice %34 {offsets = [0, 0], sizes = [7, 256], strides = [1, 1]} : vector<8x256xf32> to vector<7x256xf32>
    %cst_10 = arith.constant dense<0.000000e+00> : vector<256xf32>
    %36 = vector.multi_reduction <add>, %35, %cst_10 [0] : vector<7x256xf32> to vector<256xf32>
    %37 = vector.shape_cast %36 : vector<256xf32> to vector<1x256xf32>
    %38 = arith.mulf %37, %20 : vector<1x256xf32>
    %39 = vector.extract_strided_slice %34 {offsets = [7, 0], sizes = [1, 256], strides = [1, 1]} : vector<8x256xf32> to vector<1x256xf32>
    %40 = arith.mulf %39, %27 : vector<1x256xf32>
    %41 = vector.extract_strided_slice %14 {offsets = [7, 0], sizes = [1, 256], strides = [1, 1]} : vector<8x256xf32> to vector<1x256xf32>
    %cst_11 = arith.constant 0.00999999977 : f32
    %42 = vector.broadcast %cst_11 : f32 to vector<1x256xf32>
    %43 = arith.addf %41, %42 : vector<1x256xf32>
    %44 = math.log %43 : vector<1x256xf32>
    %cst_12 = arith.constant 0.000000e+00 : f32
    %45 = vector.broadcast %cst_12 : f32 to vector<1x256xf32>
    %46 = arith.subf %45, %44 : vector<1x256xf32>
    %47 = arith.mulf %46, %20 : vector<1x256xf32>
    %48 = tpu.iota {dimensions = array<i32: 0>} : vector<8x256xi32>
    %49 = vector.broadcast %4 : vector<1x256xi32> to vector<8x256xi32>
    %50 = arith.cmpi eq, %48, %49 : vector<8x256xi32>
    %51 = arith.extui %50 : vector<8x256xi1> to vector<8x256xi32>
    %52 = arith.sitofp %51 : vector<8x256xi32> to vector<8x256xf32>
    %53 = arith.mulf %3, %52 : vector<8x256xf32>
    %cst_13 = arith.constant dense<0.000000e+00> : vector<256xf32>
    %54 = vector.multi_reduction <add>, %53, %cst_13 [0] : vector<8x256xf32> to vector<256xf32>
    %55 = vector.shape_cast %54 : vector<256xf32> to vector<1x256xf32>
    %56 = arith.subf %16, %55 : vector<1x256xf32>
    %57 = arith.mulf %56, %27 : vector<1x256xf32>
    %c0_14 = arith.constant 0 : index
    %c0_15 = arith.constant 0 : index
    %c0_16 = arith.constant 0 : index
    %58 = vector.load %arg4[%c0_14, %c0_15, %c0_16] : memref<1x1x256xf32, #tpu.memory_space<vmem>>, vector<1x1x256xf32>
    %59 = vector.shape_cast %58 : vector<1x1x256xf32> to vector<1x256xf32>
    %60 = arith.addf %59, %38 : vector<1x256xf32>
    %c0_17 = arith.constant 0 : index
    %c0_18 = arith.constant 0 : index
    %c0_19 = arith.constant 0 : index
    %61 = vector.load %arg4[%c0_17, %c0_18, %c0_19] : memref<1x1x256xf32, #tpu.memory_space<vmem>>, vector<1x1x256xf32>
    %62 = vector.shape_cast %61 : vector<1x1x256xf32> to vector<1x256xf32>
    %63 = vector.shape_cast %60 : vector<1x256xf32> to vector<1x1x256xf32>
    tpu.vector_store %arg4[%c0_17, %c0_18, %c0_19], %63 {strides = array<i32>} : memref<1x1x256xf32, #tpu.memory_space<vmem>>, vector<1x1x256xf32>,
    %c0_20 = arith.constant 0 : index
    %c0_21 = arith.constant 0 : index
    %c0_22 = arith.constant 0 : index
    %64 = vector.load %arg5[%c0_20, %c0_21, %c0_22] : memref<1x1x256xf32, #tpu.memory_space<vmem>>, vector<1x1x256xf32>
    %65 = vector.shape_cast %64 : vector<1x1x256xf32> to vector<1x256xf32>
    %66 = arith.addf %65, %47 : vector<1x256xf32>
    %c0_23 = arith.constant 0 : index
    %c0_24 = arith.constant 0 : index
    %c0_25 = arith.constant 0 : index
    %67 = vector.load %arg5[%c0_23, %c0_24, %c0_25] : memref<1x1x256xf32, #tpu.memory_space<vmem>>, vector<1x1x256xf32>
    %68 = vector.shape_cast %67 : vector<1x1x256xf32> to vector<1x256xf32>
    %69 = vector.shape_cast %66 : vector<1x256xf32> to vector<1x1x256xf32>
    tpu.vector_store %arg5[%c0_23, %c0_24, %c0_25], %69 {strides = array<i32>} : memref<1x1x256xf32, #tpu.memory_space<vmem>>, vector<1x1x256xf32>,
    %c0_26 = arith.constant 0 : index
    %c0_27 = arith.constant 0 : index
    %c0_28 = arith.constant 0 : index
    %70 = vector.load %arg6[%c0_26, %c0_27, %c0_28] : memref<1x1x256xf32, #tpu.memory_space<vmem>>, vector<1x1x256xf32>
    %71 = vector.shape_cast %70 : vector<1x1x256xf32> to vector<1x256xf32>
    %72 = arith.addf %71, %57 : vector<1x256xf32>
    %c0_29 = arith.constant 0 : index
    %c0_30 = arith.constant 0 : index
    %c0_31 = arith.constant 0 : index
    %73 = vector.load %arg6[%c0_29, %c0_30, %c0_31] : memref<1x1x256xf32, #tpu.memory_space<vmem>>, vector<1x1x256xf32>
    %74 = vector.shape_cast %73 : vector<1x1x256xf32> to vector<1x256xf32>
    %75 = vector.shape_cast %72 : vector<1x256xf32> to vector<1x1x256xf32>
    tpu.vector_store %arg6[%c0_29, %c0_30, %c0_31], %75 {strides = array<i32>} : memref<1x1x256xf32, #tpu.memory_space<vmem>>, vector<1x1x256xf32>,
    %c0_32 = arith.constant 0 : index
    %c0_33 = arith.constant 0 : index
    %c0_34 = arith.constant 0 : index
    %76 = vector.load %arg7[%c0_32, %c0_33, %c0_34] : memref<1x1x256xf32, #tpu.memory_space<vmem>>, vector<1x1x256xf32>
    %77 = vector.shape_cast %76 : vector<1x1x256xf32> to vector<1x256xf32>
    %78 = arith.addf %77, %40 : vector<1x256xf32>
    %c0_35 = arith.constant 0 : index
    %c0_36 = arith.constant 0 : index
    %c0_37 = arith.constant 0 : index
    %79 = vector.load %arg7[%c0_35, %c0_36, %c0_37] : memref<1x1x256xf32, #tpu.memory_space<vmem>>, vector<1x1x256xf32>
    %80 = vector.shape_cast %79 : vector<1x1x256xf32> to vector<1x256xf32>
    %81 = vector.shape_cast %78 : vector<1x256xf32> to vector<1x1x256xf32>
    tpu.vector_store %arg7[%c0_35, %c0_36, %c0_37], %81 {strides = array<i32>} : memref<1x1x256xf32, #tpu.memory_space<vmem>>, vector<1x1x256xf32>,
    return
  }
  func.func @transform_0(%arg0: i32, %arg1: i32) -> (i32, i32) {
    %c1_i32 = arith.constant 1 : i32
    %0 = arith.muli %arg0, %c1_i32 : i32
    %1 = arith.addi %0, %arg1 : i32
    %c0_i32 = arith.constant 0 : i32
    %c0_i32_0 = arith.constant 0 : i32
    return %c0_i32, %1 : i32, i32
  }
  func.func @transform_1(%arg0: i32, %arg1: i32) -> (i32, i32) {
    %c1_i32 = arith.constant 1 : i32
    %0 = arith.muli %arg0, %c1_i32 : i32
    %1 = arith.addi %0, %arg1 : i32
    %c0_i32 = arith.constant 0 : i32
    %c0_i32_0 = arith.constant 0 : i32
    return %c0_i32, %1 : i32, i32
  }
  func.func @transform_2(%arg0: i32, %arg1: i32) -> (i32, i32, i32) {
    %c0_i32 = arith.constant 0 : i32
    %c0_i32_0 = arith.constant 0 : i32
    %c0_i32_1 = arith.constant 0 : i32
    return %arg0, %c0_i32, %c0_i32_0 : i32, i32, i32
  }
  func.func @transform_3(%arg0: i32, %arg1: i32) -> (i32, i32, i32) {
    %c0_i32 = arith.constant 0 : i32
    %c0_i32_0 = arith.constant 0 : i32
    %c0_i32_1 = arith.constant 0 : i32
    return %arg0, %c0_i32, %c0_i32_0 : i32, i32, i32
  }
  func.func @transform_4(%arg0: i32, %arg1: i32) -> (i32, i32, i32) {
    %c0_i32 = arith.constant 0 : i32
    %c0_i32_0 = arith.constant 0 : i32
    %c0_i32_1 = arith.constant 0 : i32
    return %arg0, %c0_i32, %c0_i32_0 : i32, i32, i32
  }
  func.func @transform_5(%arg0: i32, %arg1: i32) -> (i32, i32, i32) {
    %c0_i32 = arith.constant 0 : i32
    %c0_i32_0 = arith.constant 0 : i32
    %c0_i32_1 = arith.constant 0 : i32
    return %arg0, %c0_i32, %c0_i32_0 : i32, i32, i32
  }
}

</mosaic_0001>

<bundles_post_ra>
// kernel: tpu_custom_call.1
= control target key start
LH: loop header
LB: loop body
LE: loop exit
PB: predicated region body
PF: predicated region fallthrough
CT: control target
= control target key end

     0   :  { %s1698_s0 = inlined_call_operand.hbm [shape: f32[8,512], index: 0, kind: input, shape index: {}]   ;;  %s1699_s1 = inlined_call_operand.hbm [shape: s32[1,512], index: 1, kind: input, shape index: {}]   ;;  %s1700_s2 = inlined_call_operand.hbm [shape: f32[2,1,256], index: 2, kind: output, shape index: {0}]   ;;  %s1701_s3 = inlined_call_operand.hbm [shape: f32[2,1,256], index: 3, kind: output, shape index: {1}]   ;;  %s1702_s4 = inlined_call_operand.hbm [shape: f32[2,1,256], index: 4, kind: output, shape index: {2}]   ;;  %s1703_s5 = inlined_call_operand.hbm [shape: f32[2,1,256], index: 5, kind: output, shape index: {3}]  }
   0x1   :  { %1708 = sst [smem:[#allocation19_spill]] %s1698_s0 }
   0x2   :  { %1709 = sst [smem:[#allocation20_spill]] %s1699_s1 }
   0x3   :  { %11 = vsyncpa [#allocation3], 0 }
   0x4   :  { %13 = vsyncpa [#allocation3 + $0x1], 0 }
   0x5   :  { %14 = vsyncpa [#allocation6], 0 }
   0x6   :  { %16 = vsyncpa [#allocation6 + $0x1], 0 }
   0x7   :  { %17 = vsyncpa [#allocation4], 0 }
   0x8   :  { %19 = vsyncpa [#allocation4 + $0x1], 0 }
   0x9   :  { %20 = vsyncpa [#allocation9], 0 }
   0xa   :  { %22 = vsyncpa [#allocation9 + $0x1], 0 }
   0xb   :  { %23 = vsyncpa [#allocation12], 0 }
   0xc   :  { %25 = vsyncpa [#allocation12 + $0x1], 0  ;;  %s1270_s18 = smov 0   ;;  %s1272_s19 = smov 0  }
   0xd   :  { %s1274_s20 = smov 0   ;;  %s1276_s21 = smov 0  }
   0xe   :  { %s1278_s22 = smov 0   ;;  %s1280_s23 = smov 0  }
   0xf LB: > { %s1301_s24 = sadd.s32 4294967295, %s1230_s23   ;;  %s1705_s25 = sadd.s32 4294967294, %s1230_s23   ;;  %s1230_s23 = sphi %s1280_s23, %s31_s23   ;;  %s1226_s22 = sphi %s1278_s22, %s1734_s22   ;;  %s1222_s21 = sphi %s1276_s21, %s1733_s21   ;;  %s1218_s20 = sphi %s1274_s20, %s1732_s20   ;;  %s1214_s19 = sphi %s1272_s19, %s1731_s19   ;;  %s1210_s18 = sphi %s1270_s18, %s1730_s18  }
  0x10   : > { %s43_s26 = sadd.s32 1, %s1226_s22  ;;  %s52_s27 = sadd.s32 1, %s1218_s20 }
  0x11   : > { %p45_p0 = scmp.ge.s32.totalorder %s43_s26, 2  ;;  %p59_p1 = scmp.ne.s32.totalorder %s1218_s20, %s1214_s19 }
  0x12   : > { %p60_p2 = scmp.eq.s32.totalorder %s1230_s23, 0  ;;  %p65_p3 = scmp.ne.s32.totalorder %s1214_s19, %s1210_s18 }
  0x13   : > { %s1736_s26 = smov (%p45_p0, %s43_s26), 0  ;;  %p66_p5 = scmp.eq.s32.totalorder %s1301_s24, 0 }
  0x14   : > { %1710 = sst [smem:[#allocation18_spill]] %s1736_s26  ;;  %p1313_p4 = por %p60_p2, %p59_p1 }
  0x15   : > { %s49_s29 = ssub.s32 %s1226_s22, %s1736_s26  ;;  %p117_p6 = scmp.eq.s32.totalorder %s1301_s24, 1 }
  0x16   : > { %p50_p7 = scmp.eq.s32.totalorder %s49_s29, 0  ;;  %p1321_p8 = por %p66_p5, %p65_p3 }
  0x17   : > { %p1325_p9 = por %p117_p6, %p59_p1  ;;  %p123_p10 = scmp.eq.s32.totalorder %s1705_s25, 1 }
  0x18   : > { %s1712_s30 = scalar_select %p1321_p8, 1, 0 }
  0x19   : > { %s1713_s6 = scalar_select %p1325_p9, 1, 0 }
  0x1a   : > { %s1332_s7 = scalar_select %p50_p7, %s1218_s20, %s52_s27  }
  0x1b   : > { %p1334_p11 = por %p123_p10, %p65_p3  ;;  %p920_p13 = scmp.lt.s32.totalorder %s1230_s23, 2 }
  0x1c   : > { %s1341_s9 = sand.u32 1, %s1218_s20   ;;  %s882_s11 = sshll.u32 %s1226_s22, 8 }
  0x1d   : > { %s1714_s8 = scalar_select %p1334_p11, 1, 0 }
  0x1e   : > { %s851_s10 = sshll.u32 %s1341_s9, 4  ;;  %s1715_s0 = sld [smem:[#allocation19_spill]] }
  0x1f   : > { %s225_s15 = scalar_lea.vmem [#allocation2], %s851_s10  ;;  %p1354_p0 = pnand %p920_p13, %p1313_p4 }
  0x20   : > { %s234_s16 = sshll.u32 %s225_s15, 4  ;;  %s222_s27 = scalar_lea.sflag [#allocation3], %s1341_s9  ;;  %s1350_s16 = int_to_ptr.vmem [resolvable:$true] %s234_s16 }
  0x21   : > { %p994_p5 = pneg %p1354_p0 }
  0x24   : > { %s1348_s14 = scalar_lea.hbm %s1715_s0, %s882_s11  ;;  %s997_s28 = scalar_lea.hbm %s1715_s0, 512 }
  0x25   : > { %s992_s29 = scalar_lea.hbm %s1348_s14, 256  ;;  %p998_p4 = scmp.lt.u32.totalorder %s1348_s14, %s1715_s0 }
  0x26   : > { %p993_p3 = scmp.ne.s32.totalorder %s1348_s14, %s992_s29  ;;  %p999_p10 = scmp.lt.u32.totalorder %s997_s28, %s992_s29 }
  0x27   : > { %p1001_p12 = scmp.lt.u32.totalorder %s992_s29, %s1348_s14 }
  0x28   : > { %p995_p6 = pnand %p994_p5, %p993_p3  ;;  %p1000_p13 = por %p999_p10, %p998_p4 }
  0x2a   : > { %p996_p7 = pneg %p995_p6  ;;  %p1002_p1 = por %p1001_p12, %p1000_p13 }
  0x2c   : > { %p1003_p2 = pnand %p1002_p1, %p996_p7 }
  0x2e   : > { %1006 = shalt.err (!%p1003_p2)
}
  0x2f   : > { %s1007_s15 = scalar_lea.vmem %s1350_s16, 256  ;;  %s1232_s10 = smov [#allocation2]  }
  0x30   : > { %p1008_p3 = scmp.ne.s32.totalorder %s1350_s16, %s1007_s15  ;;  %s1012_s11 = sshll.u32 %s1232_s10, 4  ;;  %s1013_s11 = int_to_ptr.vmem [resolvable:$false] %s1012_s11 }
  0x31   : > { %s1014_s12 = scalar_lea.vmem %s1013_s11, 512  ;;  %p1015_p9 = scmp.lt.s32.totalorder %s1350_s16, %s1013_s11 }
  0x32   : > { %p1010_p6 = pnand %p1008_p3, %p994_p5  ;;  %p1016_p4 = scmp.lt.s32.totalorder %s1014_s12, %s1007_s15 }
  0x34   : > { %p1011_p11 = pneg %p1010_p6  ;;  %p1017_p10 = por %p1016_p4, %p1015_p9 }
  0x36   : > { %p1018_p12 = pnand %p1017_p10, %p1011_p11 }
  0x38   : > { %1021 = shalt.err (!%p1018_p12)
}
  0x39   : > { %903 = dma.hbm_to_vmem [thread:$0]  (!%p1354_p0), %s1348_s14, 256, %s1350_s16, %s222_s27  }
  0x3a   : > { %p1717_p1 = scmp.lt.s32.totalorder %s1230_s23, 3  ;;  %p1718_p2 = scmp.ge.s32.totalorder %s1230_s23, 1 }
  0x3b   : > { %s854_s28 = sshll.u32 %s1341_s9, 1  ;;  %s883_s13 = sshll.u32 %s1226_s22, 5 }
  0x3c   : > { %p1390_p7 = pnand %p1718_p2, %p1717_p1  ;;  %s1720_s1 = sld [smem:[#allocation20_spill]] }
  0x3d   : > { %s245_s12 = scalar_lea.vmem [#allocation5], %s854_s28  ;;  %s242_s14 = scalar_lea.sflag [#allocation6], %s1341_s9 }
  0x3e   : > { %s1719_s29 = scalar_select %p1390_p7, 1, 0 }
  0x3f   : > { %s254_s25 = sshll.u32 %s245_s12, 4  ;;  %s255_s25 = int_to_ptr.vmem [resolvable:$true] %s254_s25 }
  0x42   : > { %s1399_s11 = scalar_lea.hbm %s1720_s1, %s883_s13  ;;  %s1027_s15 = scalar_lea.hbm %s1720_s1, 64 }
  0x43   : > { %s1022_s16 = scalar_lea.hbm %s1399_s11, 32  ;;  %p1028_p3 = scmp.lt.u32.totalorder %s1399_s11, %s1720_s1 }
  0x44   : > { %p1023_p9 = scmp.ne.s32.totalorder %s1399_s11, %s1022_s16  ;;  %p1029_p6 = scmp.lt.u32.totalorder %s1027_s15, %s1022_s16 }
  0x45   : > { %p1031_p10 = scmp.lt.u32.totalorder %s1022_s16, %s1399_s11 }
  0x46   : > { %p1025_p11 = pnand %p1023_p9, %p994_p5  ;;  %p1030_p4 = por %p1029_p6, %p1028_p3 }
  0x48   : > { %p1026_p13 = pneg %p1025_p11  ;;  %p1032_p12 = por %p1031_p10, %p1030_p4 }
  0x4a   : > { %p1033_p1 = pnand %p1032_p12, %p1026_p13 }
  0x4c   : > { %1036 = shalt.err (!%p1033_p1)
}
  0x4d   : > { %s1037_s9 = scalar_lea.vmem %s255_s25, 32  ;;  %s1233_s28 = smov [#allocation5]  }
  0x4e   : > { %p1038_p2 = scmp.ne.s32.totalorder %s255_s25, %s1037_s9  ;;  %s1042_s0 = sshll.u32 %s1233_s28, 4  ;;  %s1043_s0 = int_to_ptr.vmem [resolvable:$false] %s1042_s0 }
  0x4f   : > { %s1044_s12 = scalar_lea.vmem %s1043_s0, 64  ;;  %p1045_p8 = scmp.lt.s32.totalorder %s255_s25, %s1043_s0 }
  0x50   : > { %p1040_p9 = pnand %p1038_p2, %p994_p5  ;;  %p1046_p7 = scmp.lt.s32.totalorder %s1044_s12, %s1037_s9 }
  0x52   : > { %p1041_p11 = pneg %p1040_p9  ;;  %p1047_p3 = por %p1046_p7, %p1045_p8 }
  0x54   : > { %p1048_p6 = pnand %p1047_p3, %p1041_p11 }
  0x56   : > { %1051 = shalt.err (!%p1048_p6)
}
  0x57   : > { %906 = dma.hbm_to_vmem [thread:$0]  (!%p1354_p0), %s1399_s11, 32, %s255_s25, %s242_s14  }
  0x58   : > { %p1721_p13 = scmp.ne.s32.totalorder %s1719_s29, 0 }
  0x59   : > { %s1424_s16 = sand.u32 (!%p1721_p13), 1, %s1214_s19   ;;  %p1722_p5 = scmp.ne.s32.totalorder (!%p1721_p13), %s1712_s30, 0 }
  0x5a   : > { %263 = sbr.rel (%p1721_p13) target bundleno = 277 (0x115), region = 28  ;;  %s858_s27 = sshll.u32 (!%p1721_p13), %s1424_s16, 4 }
  0x5b   : > { %s266_s15 = scalar_lea.sflag (!%p1721_p13), [#allocation3], %s1424_s16  ;;  %s269_s13 = scalar_lea.vmem (!%p1721_p13), [#allocation2], %s858_s27 }
  0x61   : > { %1189 = dma.done.wait (%p1722_p5), %s266_s15, 256  }
  0x62   : > { %1191 = vsyncadd (%p1722_p5), %s266_s15, 4294967040  ;;  %s1433_s25 = sshll.u32 %s1424_s16, 1  ;;  %s275_s17 = scalar_lea.sflag [#allocation6], %s1424_s16 }
  0x63   : > { %s278_s29 = scalar_lea.vmem [#allocation5], %s1433_s25 }
  0x64   : > { %1193 = dma.done.wait (%p1722_p5), %s275_s17, 32  }
  0x65   : > { %1195 = vsyncadd (%p1722_p5), %s275_s17, 4294967264  ;;  %v333_v0 = vlaneseq  ;;  %s1446_s11 = scalar_lea.vmem [#allocation8], %s1433_s25  ;;  %v1234_v2 = vmov 0.0   ;;  %s1453_s14 = scalar_lea.vmem [#allocation7], %s1433_s25  ;;  %v341_v3 = vld [vmem:[%s269_s13] sm:$0xff]  ;;  %v342_v4 = vld [vmem:[%s269_s13 + $0x8] sm:$0xff] }
  0x66   : > { %s1460_s30 = scalar_lea.vmem [#allocation10], %s1433_s25  ;;  %s1467_s10 = scalar_lea.vmem [#allocation11], %s1433_s25  ;;  %v344_v5 = vrot.slane %v341_v3, 4  ;;  %v350_v6 = vrot.slane %v342_v4, 4  ;;  %v1486_v23 = vld [vmem:[%s278_s29] sm:$0x3] }
  0x67   : > { %vm1441_vm0 = vcmp.lt.s32.totalorder %v333_v0, 256  ;;  %v1477_v17 = vshrl.u32 %v333_v0, 7  ;;  %vm387_vm3 = vcmp.ge.s32.totalorder %v1486_v23, 0  ;;  %vm388_vm4 = vcmp.lt.s32.totalorder %v1486_v23, 7  ;;  %s637_s9 = sshll.u32 %s1460_s30, 4  ;;  %s584_s28 = sand.u32 1, %s1301_s24   ;;  %s1529_s9 = int_to_ptr.vmem [resolvable:$true] %s637_s9 }
  0x68   : > { %338 = vst.msk [vmem:[%s1446_s11] sm:$0x3] %vm1441_vm0, %v1234_v2  ;;  %337 = vst.msk [vmem:[%s1453_s14] sm:$0x3] %vm1441_vm0, %v1234_v2  ;;  %v345_v7 = vmax.f32 %v341_v3, %v344_v5  ;;  %v351_v8 = vmax.f32 %v342_v4, %v350_v6  ;;  %v1235_v60 = vmov 1966171168  }
  0x69   : > { %339 = vst.msk [vmem:[%s1460_s30] sm:$0x3] %vm1441_vm0, %v1234_v2  ;;  %340 = vst.msk [vmem:[%s1467_s10] sm:$0x3] %vm1441_vm0, %v1234_v2  ;;  %v1482_v22 = vsub.s32 0, %v1477_v17  ;;  %v1489_v24 = vsub.s32 1, %v1477_v17  ;;  %v492_v61 = vunpack.c.l.s4 %v1235_v60 }
  0x6a   : > { %v346_v9 = vrot.slane %v345_v7, 2  ;;  %v352_v10 = vrot.slane %v351_v8, 2  ;;  %vm389_vm5 = vmand %vm387_vm3, %vm388_vm4  ;;  %vm384_vm6 = vcmp.ge.s32.totalorder %v1486_v23, 7  ;;  %vm402_vm7 = vcmask 1046528   ;;  %s1526_s0 = sshll.u32 %s1222_s21, 5  ;;  %s623_s12 = sshll.u32 %s1446_s11, 4  ;;  %s1540_s12 = int_to_ptr.vmem [resolvable:$true] %s623_s12 }
  0x6b   : > { %v458_v25 = vrot.slane %v1486_v23, %v1482_v22  ;;  %v462_v26 = vrot.slane %v1486_v23, %v1489_v24  ;;  %v865_v62 = vsel %vm389_vm5, 1.0, %v1234_v2  ;;  %s651_s27 = sshll.u32 %s1467_s10, 4  ;;  %s1538_s15 = scalar_lea.hbm %s1701_s3, %s1526_s0  ;;  %s1559_s27 = int_to_ptr.vmem [resolvable:$true] %s651_s27 }
  0x6c   : > { %v347_v11 = vmax.f32 %v345_v7, %v346_v9  ;;  %v353_v12 = vmax.f32 %v351_v8, %v352_v10  ;;  %s1546_s17 = scalar_lea.hbm %s1702_s4, %s1526_s0  ;;  %s1557_s21 = scalar_lea.hbm %s1703_s5, %s1526_s0 }
  0x6d   : > { %vm463_vm1 = vcmp.eq.s32.totalorder %v1477_v17, %v458_v25  ;;  %vm464_vm2 = vcmp.eq.s32.totalorder %v1477_v17, %v462_v26  ;;  %s1563_s24 = scalar_lea.sflag [#allocation9], %s584_s28  ;;  %s1052_s13 = scalar_lea.vmem %s1540_s12, 32 }
  0x6e   : > { %v348_v13 = vrot.slane %v347_v11, 1  ;;  %v354_v14 = vrot.slane %v353_v12, 1  ;;  %v866_v27 = vsel %vm463_vm1, 1.0, %v1234_v2  ;;  %v867_v29 = vsel %vm464_vm2, 1.0, %v1234_v2  ;;  %p1053_p8 = scmp.ne.s32.totalorder %s1540_s12, %s1052_s13  ;;  %p1725_p0 = scmp.ne.s32.totalorder %s1713_s6, 0 }
  0x6f   : > { %v469_v33 = vmul.f32 %v866_v27, %v341_v3  ;;  %v470_v35 = vmul.f32 %v867_v29, %v342_v4 }
  0x70   : > { %v1473_v15 = vmax.f32 %v347_v11, %v348_v13  ;;  %v1475_v16 = vmax.f32 %v353_v12, %v354_v14  ;;  %v434_v14 = vrot.slane %v865_v62, %v1482_v22  ;;  %p1054_p7 = pnand %p1053_p8, %p1725_p0 }
  0x71   : > { %v471_v39 = vrot.slane %v469_v33, 4  ;;  %v477_v41 = vrot.slane %v470_v35, 4 }
  0x72   : > { %v356_v18 = vsub.f32 %v341_v3, %v1473_v15  ;;  %v357_v19 = vsub.f32 %v342_v4, %v1475_v16  ;;  %p1055_p4 = pneg %p1054_p7 }
  0x73   : > { %v472_v45 = vadd.f32 %v471_v39, %v469_v33  ;;  %v478_v47 = vadd.f32 %v477_v41, %v470_v35 }
  0x74   : > { %v358_v20 = vmul.f32 1.442695, %v356_v18  ;;  %v360_v21 = vmul.f32 1.442695, %v357_v19  ;;  %v493_v19 = vunpack.c.0.s8 %v492_v61  ;;  %v512_v61 = vld [vmem:[%s1446_s11] sm:$0x3] }
  0x75   : > { %v473_v49 = vrot.slane %v472_v45, 2  ;;  %v479_v50 = vrot.slane %v478_v47, 2 }
  0x76   : > { %972 = vpow2.f32 %v358_v20  ;;  %v438_v20 = vrot.slane %v865_v62, %v1489_v24 }
  0x77   : > { %974 = vpow2.f32 %v360_v21  ;;  %v474_v51 = vadd.f32 %v473_v49, %v472_v45  ;;  %v480_v52 = vadd.f32 %v479_v50, %v478_v47 }
  0x79   : > { %v475_v53 = vrot.slane %v474_v51, 1  ;;  %v481_v55 = vrot.slane %v480_v52, 1 }
  0x7b   : > { %v476_v5 = vadd.f32 %v475_v53, %v474_v51  ;;  %v482_v9 = vadd.f32 %v481_v55, %v480_v52 }
  0x80   : > { %v973_v28 = vpop.eup %972 }
  0x81   : > { %v975_v30 = vpop.eup %974  ;;  %v362_v31 = vrot.slane %v973_v28, 4 }
  0x82   : > { %v368_v32 = vrot.slane %v975_v30, 4 }
  0x83   : > { %v363_v34 = vadd.f32 %v973_v28, %v362_v31 }
  0x84   : > { %v369_v36 = vadd.f32 %v975_v30, %v368_v32 }
  0x85   : > { %v364_v37 = vrot.slane %v363_v34, 2 }
  0x86   : > { %v370_v38 = vrot.slane %v369_v36, 2 }
  0x87   : > { %v365_v40 = vadd.f32 %v364_v37, %v363_v34 }
  0x88   : > { %v371_v42 = vadd.f32 %v370_v38, %v369_v36 }
  0x89   : > { %v366_v43 = vrot.slane %v365_v40, 1 }
  0x8a   : > { %v372_v44 = vrot.slane %v371_v42, 1 }
  0x8b   : > { %v367_v46 = vadd.f32 %v366_v43, %v365_v40 }
  0x8c   : > { %v373_v48 = vadd.f32 %v372_v44, %v371_v42 }
  0x8d   : > { %976 = vrcp.f32 %v367_v46 }
  0x8e   : > { %978 = vrcp.f32 %v373_v48 }
  0x8f   : > { %980 = vlog2.f32 %v367_v46 }
  0x90   : > { %982 = vlog2.f32 %v373_v48 }
  0x97   : > { %v977_v54 = vpop.eup %976 }
  0x98   : > { %v979_v56 = vpop.eup %978  ;;  %v376_v57 = vmul.f32 %v977_v54, %v973_v28 }
  0x99   : > { %v981_v58 = vpop.eup %980  ;;  %v377_v59 = vmul.f32 %v979_v56, %v975_v30  ;;  %v535_v30 = vld [vmem:[%s1460_s30] sm:$0x3] }
  0x9a   : > { %v983_v63 = vpop.eup %982  ;;  %v443_v0 = vadd.f32 0.01, %v376_v57  ;;  %v392_v3 = vsub.f32 1.0, %v376_v57  ;;  %v379_v4 = vmul.f32 0.6931472, %v981_v58 }
  0x9b   : > { %v444_v6 = vadd.f32 0.01, %v377_v59  ;;  %v393_v7 = vsub.f32 1.0, %v377_v59  ;;  %v381_v8 = vmul.f32 0.6931472, %v983_v63 }
  0x9c   : > { %984 = vlog2.f32 %v443_v0  ;;  %v394_v10 = vadd.f32 0.01, %v392_v3  ;;  %v382_v11 = vadd.f32 %v379_v4, %v1473_v15  ;;  %v1508_v15 = vsub.s32 %v493_v19, %v1477_v17 }
  0x9d   : > { %986 = vlog2.f32 %v444_v6  ;;  %v395_v12 = vadd.f32 0.01, %v393_v7  ;;  %v383_v13 = vadd.f32 %v381_v8, %v1475_v16  ;;  %v864_v16 = vsel %vm384_vm6, 1.0, %v1234_v2 }
  0x9e   : > { %988 = vlog2.f32 %v394_v10  ;;  %v483_v18 = vsub.f32 %v382_v11, %v476_v5  ;;  %v421_v32 = vrot.slane %v864_v16, %v1482_v22  ;;  %v425_v23 = vrot.slane %v864_v16, %v1489_v24  ;;  %v556_v5 = vld [vmem:[%s1467_s10] sm:$0x3] }
  0x9f   : > { %990 = vlog2.f32 %v395_v12  ;;  %v484_v21 = vsub.f32 %v383_v13, %v482_v9 }
  0xa0   : > { %v485_v25 = vmul.f32 %v483_v18, %v434_v14 }
  0xa1   : > { %v486_v26 = vmul.f32 %v484_v21, %v438_v20 }
  0xa3   : > { %v538_v27 = vcombine.low %v485_v25, %v486_v26 }
  0xa5   : > { %v545_v28 = vrot.slane %v538_v27, %v1508_v15 }
  0xa6   : > { %v985_v29 = vpop.eup %984 }
  0xa7   : > { %v987_v31 = vpop.eup %986  ;;  %v446_v33 = vmul.f32 0.6931472, %v985_v29  ;;  %v552_v34 = vrot.slane %v545_v28, %v1508_v15 }
  0xa8   : > { %v989_v35 = vpop.eup %988  ;;  %v448_v36 = vmul.f32 0.6931472, %v987_v31 }
  0xa9   : > { %v991_v17 = vpop.eup %990  ;;  %v449_v37 = vsub.f32 0.0, %v446_v33  ;;  %v397_v38 = vmul.f32 0.6931472, %v989_v35  ;;  %v554_v39 = vadd.f32 %v552_v34, %v535_v30 }
  0xaa   : > { %v450_v2 = vsub.f32 0.0, %v448_v36  ;;  %v399_v40 = vmul.f32 0.6931472, %v991_v17 }
  0xab   : > { %v451_v41 = vmul.f32 %v449_v37, %v421_v32  ;;  %v400_v42 = vsub.f32 0.0, %v397_v38  ;;  %555 = vst.msk [vmem:[%s1460_s30] sm:$0x3] %vm1441_vm0, %v554_v39 }
  0xac   : > { %v452_v22 = vmul.f32 %v450_v2, %v425_v23  ;;  %v401_v43 = vsub.f32 0.0, %v399_v40 }
  0xad   : > { %v403_v44 = vsel %vm402_vm7, %v400_v42, 0.0  ;;  %v441_v45 = vmul.f32 %v434_v14, %v400_v42 }
  0xae   : > { %v515_v46 = vcombine.high %v451_v41, %v452_v22  ;;  %v404_v24 = vrot.slane %v403_v44, 4  ;;  %v410_v47 = vsel %vm402_vm7, %v401_v43, 0.0  ;;  %v442_v48 = vmul.f32 %v438_v20, %v401_v43 }
  0xaf   : > { %v411_v49 = vrot.slane %v410_v47, 4 }
  0xb0   : > { %v522_v50 = vrot.slane %v515_v46, %v1508_v15  ;;  %v405_v51 = vadd.f32 %v404_v24, %v403_v44  ;;  %v559_v52 = vcombine.high %v441_v45, %v442_v48 }
  0xb1   : > { %v412_v53 = vadd.f32 %v411_v49, %v410_v47 }
  0xb2   : > { %v523_v54 = vcombine.high %v522_v50, %v522_v50  ;;  %v406_v55 = vrot.slane %v405_v51, 2  ;;  %v566_v56 = vrot.slane %v559_v52, %v1508_v15 }
  0xb3   : > { %v413_v57 = vrot.slane %v412_v53, 2 }
  0xb4   : > { %v530_v58 = vrot.slane %v523_v54, %v1508_v15  ;;  %v407_v59 = vadd.f32 %v406_v55, %v405_v51  ;;  %v567_v60 = vcombine.high %v566_v56, %v566_v56 }
  0xb5   : > { %v414_v62 = vadd.f32 %v413_v57, %v412_v53 }
  0xb6   : > { %v531_v63 = vcombine.high %v530_v58, %v530_v58  ;;  %v408_v0 = vrot.slane %v407_v59, 1  ;;  %v574_v3 = vrot.slane %v567_v60, %v1508_v15 }
  0xb7   : > { %v415_v4 = vrot.slane %v414_v62, 1 }
  0xb8   : > { %v533_v6 = vadd.f32 %v531_v63, %v512_v61  ;;  %v409_v7 = vadd.f32 %v408_v0, %v407_v59  ;;  %v575_v8 = vcombine.high %v574_v3, %v574_v3 }
  0xb9   : > { %v416_v9 = vadd.f32 %v415_v4, %v414_v62 }
  0xba   : > { %534 = vst.msk [vmem:[%s1446_s11] sm:$0x3] %vm1441_vm0, %v533_v6  ;;  %v1551_v10 = vmul.f32 %v421_v32, %v409_v7  ;;  %v577_v11 = vadd.f32 %v575_v8, %v556_v5  ;;  %s1236_s11 = smov [#allocation8]  }
  0xbb   : > { %v1561_v12 = vmul.f32 %v425_v23, %v416_v9  ;;  %s1056_s25 = sshll.u32 %s1236_s11, 4  ;;  %s1057_s25 = int_to_ptr.vmem [resolvable:$false] %s1056_s25 }
  0xbc   : > { %s1058_s1 = scalar_lea.vmem %s1057_s25, 64  ;;  %p1059_p10 = scmp.lt.s32.totalorder %s1540_s12, %s1057_s25 }
  0xbd   : > { %p1060_p12 = scmp.lt.s32.totalorder %s1058_s1, %s1052_s13 }
  0xbf   : > { %p1061_p1 = por %p1060_p12, %p1059_p10 }
  0xc1   : > { %p1062_p2 = pnand %p1061_p1, %p1055_p4 }
  0xc3   : > { %1065 = shalt.err (!%p1062_p2)
}
  0xc4   : > { %s1066_s28 = scalar_lea.hbm %s1538_s15, 32  ;;  %s1070_s11 = scalar_lea.hbm %s1701_s3, 64 }
  0xc5   : > { %p1067_p9 = scmp.ne.s32.totalorder %s1538_s15, %s1066_s28  ;;  %p1071_p6 = scmp.lt.u32.totalorder %s1538_s15, %s1701_s3 }
  0xc6   : > { %p1072_p13 = scmp.lt.u32.totalorder %s1070_s11, %s1066_s28  ;;  %p1074_p8 = scmp.lt.u32.totalorder %s1066_s28, %s1538_s15 }
  0xc7   : > { %p1068_p11 = pnand %p1067_p9, %p1725_p0 }
  0xc8   : > { %p1073_p5 = por %p1072_p13, %p1071_p6 }
  0xc9   : > { %p1069_p3 = pneg %p1068_p11 }
  0xca   : > { %p1075_p7 = por %p1074_p8, %p1073_p5 }
  0xcc   : > { %p1076_p4 = pnand %p1075_p7, %p1069_p3 }
  0xce   : > { %1079 = shalt.err (!%p1076_p4)
}
  0xcf   : > { %893 = dma.vmem_to_hbm [thread:$0]  (%p1725_p0), %s1540_s12, 32, %s1538_s15, %s1563_s24   ;;  %578 = vst.msk [vmem:[%s1467_s10] sm:$0x3] %vm1441_vm0, %v577_v11 }
  0xd0   : > { %s1080_s1 = scalar_lea.vmem %s1529_s9, 32  ;;  %s1237_s26 = smov [#allocation10]  }
  0xd1   : > { %p1081_p10 = scmp.ne.s32.totalorder %s1529_s9, %s1080_s1  ;;  %s1084_s13 = sshll.u32 %s1237_s26, 4  ;;  %s1085_s13 = int_to_ptr.vmem [resolvable:$false] %s1084_s13 }
  0xd2   : > { %s1086_s28 = scalar_lea.vmem %s1085_s13, 64  ;;  %p1087_p2 = scmp.lt.s32.totalorder %s1529_s9, %s1085_s13 }
  0xd3   : > { %p1082_p12 = pnand %p1081_p10, %p1725_p0  ;;  %p1088_p9 = scmp.lt.s32.totalorder %s1086_s28, %s1080_s1 }
  0xd5   : > { %p1083_p1 = pneg %p1082_p12  ;;  %p1089_p11 = por %p1088_p9, %p1087_p2 }
  0xd7   : > { %p1090_p3 = pnand %p1089_p11, %p1083_p1 }
  0xd9   : > { %1093 = shalt.err (!%p1090_p3)
}
  0xda   : > { %s1094_s10 = scalar_lea.hbm %s1546_s17, 32  ;;  %s1098_s29 = scalar_lea.hbm %s1702_s4, 64 }
  0xdb   : > { %p1095_p6 = scmp.ne.s32.totalorder %s1546_s17, %s1094_s10  ;;  %p1099_p8 = scmp.lt.u32.totalorder %s1546_s17, %s1702_s4 }
  0xdc   : > { %p1100_p7 = scmp.lt.u32.totalorder %s1098_s29, %s1094_s10  ;;  %p1102_p10 = scmp.lt.u32.totalorder %s1094_s10, %s1546_s17 }
  0xdd   : > { %p1096_p13 = pnand %p1095_p6, %p1725_p0 }
  0xde   : > { %p1101_p4 = por %p1100_p7, %p1099_p8 }
  0xdf   : > { %p1097_p5 = pneg %p1096_p13 }
  0xe0   : > { %p1103_p12 = por %p1102_p10, %p1101_p4 }
  0xe2   : > { %p1104_p1 = pnand %p1103_p12, %p1097_p5 }
  0xe4   : > { %1107 = shalt.err (!%p1104_p1)
}
  0xe5   : > { %894 = dma.vmem_to_hbm [thread:$0]  (%p1725_p0), %s1529_s9, 32, %s1546_s17, %s1563_s24   ;;  %v490_v13 = vcombine.low %v1551_v10, %v1561_v12 }
  0xe6   : > { %s595_s25 = scalar_lea.sflag [#allocation12], %s1424_s16  ;;  %s1108_s1 = scalar_lea.vmem %s1559_s27, 32 }
  0xe7   : > { %p1109_p2 = scmp.ne.s32.totalorder %s1559_s27, %s1108_s1  ;;  %s1238_s26 = smov [#allocation11]  }
  0xe8   : > { %s1112_s13 = sshll.u32 %s1238_s26, 4  ;;  %s1113_s13 = int_to_ptr.vmem [resolvable:$false] %s1112_s13 }
  0xe9   : > { %p1110_p9 = pnand %p1109_p2, %p1725_p0  ;;  %s1114_s28 = scalar_lea.vmem %s1113_s13, 64 }
  0xea   : > { %p1115_p3 = scmp.lt.s32.totalorder %s1559_s27, %s1113_s13  ;;  %p1116_p6 = scmp.lt.s32.totalorder %s1114_s28, %s1108_s1 }
  0xeb   : > { %p1111_p11 = pneg %p1110_p9 }
  0xec   : > { %p1117_p13 = por %p1116_p6, %p1115_p3 }
  0xee   : > { %p1118_p5 = pnand %p1117_p13, %p1111_p11 }
  0xf0   : > { %1121 = shalt.err (!%p1118_p5)
}
  0xf1   : > { %s1122_s9 = scalar_lea.hbm %s1557_s21, 32  ;;  %s1126_s10 = scalar_lea.hbm %s1703_s5, 64 }
  0xf2   : > { %p1123_p8 = scmp.ne.s32.totalorder %s1557_s21, %s1122_s9  ;;  %p1127_p10 = scmp.lt.u32.totalorder %s1557_s21, %s1703_s5 }
  0xf3   : > { %p1128_p12 = scmp.lt.u32.totalorder %s1126_s10, %s1122_s9  ;;  %p1130_p2 = scmp.lt.u32.totalorder %s1122_s9, %s1557_s21 }
  0xf4   : > { %p1124_p7 = pnand %p1123_p8, %p1725_p0 }
  0xf5   : > { %p1129_p1 = por %p1128_p12, %p1127_p10 }
  0xf6   : > { %p1125_p4 = pneg %p1124_p7 }
  0xf7   : > { %p1131_p9 = por %p1130_p2, %p1129_p1 }
  0xf9   : > { %p1132_p11 = pnand %p1131_p9, %p1125_p4 }
  0xfb   : > { %1135 = shalt.err (!%p1132_p11)
}
  0xfc   : > { %895 = dma.vmem_to_hbm [thread:$0]  (%p1725_p0), %s1559_s27, 32, %s1557_s21, %s595_s25   ;;  %v497_v14 = vrot.slane %v490_v13, %v1508_v15  ;;  %v487_v18 = vld [vmem:[%s1453_s14] sm:$0x3] }
  0xfd   : > { %s609_s29 = sshll.u32 %s1453_s14, 4  ;;  %s1644_s1 = scalar_lea.hbm %s1700_s2, %s1526_s0  ;;  %s1646_s29 = int_to_ptr.vmem [resolvable:$true] %s609_s29 }
  0xfe   : > { %v504_v19 = vrot.slane %v497_v14, %v1508_v15  ;;  %s580_s27 = scalar_lea.sflag [#allocation4], %s1424_s16  ;;  %s1136_s21 = scalar_lea.vmem %s1646_s29, 32 }
  0xff   : > { %p1137_p3 = scmp.ne.s32.totalorder %s1646_s29, %s1136_s21  ;;  %s1239_s25 = smov [#allocation7]  }
 0x100   : > { %v506_v20 = vadd.f32 %v504_v19, %v487_v18  ;;  %s1140_s26 = sshll.u32 %s1239_s25, 4  ;;  %s1141_s26 = int_to_ptr.vmem [resolvable:$false] %s1140_s26 }
 0x101   : > { %p1138_p6 = pnand %p1137_p3, %p1725_p0  ;;  %s1142_s13 = scalar_lea.vmem %s1141_s26, 64 }
 0x102   : > { %511 = vst.msk [vmem:[%s1453_s14] sm:$0x3] %vm1441_vm0, %v506_v20  ;;  %p1143_p5 = scmp.lt.s32.totalorder %s1646_s29, %s1141_s26  ;;  %p1144_p8 = scmp.lt.s32.totalorder %s1142_s13, %s1136_s21 }
 0x103   : > { %p1139_p13 = pneg %p1138_p6 }
 0x104   : > { %p1145_p7 = por %p1144_p8, %p1143_p5 }
 0x106   : > { %p1146_p4 = pnand %p1145_p7, %p1139_p13 }
 0x108   : > { %1149 = shalt.err (!%p1146_p4)
}
 0x109   : > { %s1150_s16 = scalar_lea.hbm %s1644_s1, 32  ;;  %s1154_s28 = scalar_lea.hbm %s1700_s2, 64 }
 0x10a   : > { %p1151_p10 = scmp.ne.s32.totalorder %s1644_s1, %s1150_s16  ;;  %p1155_p2 = scmp.lt.u32.totalorder %s1644_s1, %s1700_s2 }
 0x10b   : > { %p1156_p9 = scmp.lt.u32.totalorder %s1154_s28, %s1150_s16  ;;  %p1158_p3 = scmp.lt.u32.totalorder %s1150_s16, %s1644_s1 }
 0x10c   : > { %p1152_p12 = pnand %p1151_p10, %p1725_p0 }
 0x10d   : > { %p1157_p11 = por %p1156_p9, %p1155_p2 }
 0x10e   : > { %p1153_p1 = pneg %p1152_p12 }
 0x10f   : > { %p1159_p6 = por %p1158_p3, %p1157_p11 }
 0x111   : > { %p1160_p13 = pnand %p1159_p6, %p1153_p1 }
 0x113   : > { %1163 = shalt.err (!%p1160_p13)
}
 0x114   : > { %892 = dma.vmem_to_hbm [thread:$0]  (%p1725_p0), %s1646_s29, 32, %s1644_s1, %s580_s27  }
 0x115 PF: > { %s663_s24 = sand.u32 1, %s1210_s18   ;;  %p1726_p5 = scmp.ne.s32.totalorder %s1714_s8, 0 }
 0x116   : > { %p1727_p8 = scmp.ge.s32.totalorder %s1230_s23, 2  ;;  %s664_s10 = scalar_lea.sflag [#allocation4], %s663_s24 }
 0x118   : > { %p908_p7 = pnand %p1727_p8, %p1726_p5 }
 0x11a   : > { %1197 = dma.done.wait (!%p908_p7), %s664_s10, 32  }
 0x11b   : > { %1199 = vsyncadd (!%p908_p7), %s664_s10, 4294967264  ;;  %s1728_s12 = sadd.s32 4294967294, %s1230_s23  }
 0x11c   : > { %s672_s15 = sand.u32 1, %s1728_s12  }
 0x11d   : > { %s673_s30 = scalar_lea.sflag [#allocation9], %s672_s15 }
 0x11e   : > { %1201 = dma.done.wait (!%p908_p7), %s673_s30, 64  }
 0x11f   : > { %1203 = vsyncadd (!%p908_p7), %s673_s30, 4294967232  ;;  %s691_s6 = scalar_lea.sflag [#allocation12], %s663_s24 }
 0x120   : > { %1205 = dma.done.wait (!%p908_p7), %s691_s6, 32  }
 0x121   : > { %1207 = vsyncadd (!%p908_p7), %s691_s6, 4294967264  ;;  %s31_s23 = sadd.s32 1, %s1230_s23   ;;  %s1729_s8 = sld [smem:[#allocation18_spill]] }
 0x122   : > { %p28_p0 = scmp.ge.s32.totalorder %s31_s23, 4   ;;  %s1730_s18 = smov %s1214_s19 }
 0x123   : > { %s1731_s19 = smov %s1218_s20  ;;  %s1732_s20 = smov %s1332_s7 }
 0x124   : > { %s1733_s21 = smov %s1226_s22  ;;  %30 = sbr.rel (!%p28_p0) target bundleno = 15 (0xf), region = 139 }
 0x127   : > { %s1734_s22 = smov %s1729_s8 }
 0x12b   :  { %696 = vsyncpa [#allocation3], 1 }
 0x12c   :  { %698 = vsyncpa [#allocation3 + $0x1], 1 }
 0x12d   :  { %699 = vsyncpa [#allocation6], 1 }
 0x12e   :  { %701 = vsyncpa [#allocation6 + $0x1], 1 }
 0x12f   :  { %702 = vsyncpa [#allocation4], 1 }
 0x130   :  { %704 = vsyncpa [#allocation4 + $0x1], 1 }
 0x131   :  { %705 = vsyncpa [#allocation9], 1 }
 0x132   :  { %707 = vsyncpa [#allocation9 + $0x1], 1 }
 0x133   :  { %708 = vsyncpa [#allocation12], 1 }
 0x134   :  { %710 = vsyncpa [#allocation12 + $0x1], 1 }

</bundles_post_ra>
